<compile_context>
chip_gen: v7x
topology: tpu7x:2x2x1
jax: 0.10.0
libtpu: 0.0.40
codegen_flags: <defaults>
</compile_context>

<pallas_src>
import jax
import jax.numpy as jnp
from jax.experimental import pallas as pl
from jax.experimental.pallas import tpu as pltpu

IN_FEATURES = 128
HIDDEN = 128
OUT_FEATURES = 784
OUT_PAD = 896          # 784 padded up to 7*128 for the second MXU pass only
DEFAULT_TM = 2048      # batch rows per grid step (double-buffered working set
                       # ~18 MiB with the 48 MiB scoped-VMEM limit below)


def _round_up(x, m):
    return (x + m - 1) // m * m


def decoder_kernel(x_ref, w1_ref, b1_ref, w2_ref, b2_ref, o_ref):
    # x arrives as f32 (no wrapper-side cast pass); pack to bf16 on the VPU.
    x = x_ref[...].astype(jnp.bfloat16)
    # Layer 1: bf16 operands on the MXU, f32 accumulation, f32 epilogue.
    h1 = jnp.dot(x, w1_ref[...], preferred_element_type=jnp.float32)
    a1 = jnp.maximum(h1 + b1_ref[...], 0.0)
    # Layer 2: cast activations to bf16 only for the dot; f32 epilogue.
    h2 = jnp.dot(a1.astype(jnp.bfloat16), w2_ref[...],
                 preferred_element_type=jnp.float32)
    a2 = jnp.maximum(h2 + b2_ref[...], 0.0)                 # (tm, OUT_PAD) f32
    # Store only the real 784 columns; the final 16-lane sliver is a masked vst
    # on 1 of 7 vreg columns (noise), and we avoid 14% padded output bytes plus
    # the wrapper-side slice copy entirely.
    o_ref[...] = a2[:, :OUT_FEATURES].astype(o_ref.dtype)


def init_params(key):
    # Deterministic init matching nn.Linear shapes:
    #   decoder_layer1: weight [128,128], bias [128]
    #   decoder_layer2: weight [784,128], bias [784]
    # Stored transposed as [in, out] (biases as [1, out]) for the kernel.
    k1, k2, k3, k4 = jax.random.split(key, 4)
    bound1 = 1.0 / jnp.sqrt(IN_FEATURES)
    bound2 = 1.0 / jnp.sqrt(HIDDEN)
    w1 = jax.random.uniform(k1, (IN_FEATURES, HIDDEN), jnp.float32, -bound1, bound1)
    b1 = jax.random.uniform(k2, (1, HIDDEN), jnp.float32, -bound1, bound1)
    w2 = jax.random.uniform(k3, (HIDDEN, OUT_FEATURES), jnp.float32, -bound2, bound2)
    b2 = jax.random.uniform(k4, (1, OUT_FEATURES), jnp.float32, -bound2, bound2)
    return w1, b1, w2, b2


def prepare_params(w1, b1, w2, b2):
    """Cast weights to bf16 and zero-pad layer 2's lane dim to OUT_PAD."""
    pad = OUT_PAD - OUT_FEATURES
    w1_k = w1.astype(jnp.bfloat16)                                     # (128, 128)
    b1_k = b1.astype(jnp.float32)                                      # (1, 128)
    w2_k = jnp.pad(w2, ((0, 0), (0, pad))).astype(jnp.bfloat16)        # (128, 896)
    b2_k = jnp.pad(b2, ((0, 0), (0, pad))).astype(jnp.float32)         # (1, 896)
    return w1_k, b1_k, w2_k, b2_k


def _choose_tile(batch):
    batch_p8 = _round_up(batch, 8)
    tm = min(DEFAULT_TM, batch_p8)
    # Ensure >= 2 grid steps whenever possible so both v7x TensorCores get work
    # from the "parallel" axis (neutral on single-TC v5e/v6e).
    if batch_p8 // tm < 2 and batch_p8 >= 16:
        tm = _round_up(batch_p8 // 2, 8)
    batch_p = _round_up(batch_p8, tm)
    return tm, batch_p


def decoder_forward(x, params):
    w1_k, b1_k, w2_k, b2_k = params
    batch = x.shape[0]
    tm, batch_p = _choose_tile(batch)

    x_in = x
    if batch_p != batch:
        # Zero-pad trailing rows (padded rows compute relu(bias)-propagated
        # values in the output buffer but are sliced off below).
        x_in = jnp.pad(x, ((0, batch_p - batch), (0, 0)))

    grid = (batch_p // tm,)
    flops = 2 * batch_p * (IN_FEATURES * HIDDEN + HIDDEN * OUT_PAD)
    bytes_accessed = (
        batch_p * IN_FEATURES * 4                              # x (f32)
        + w1_k.size * 2 + w2_k.size * 2                        # weights (bf16)
        + b1_k.size * 4 + b2_k.size * 4                        # biases (f32)
        + batch_p * OUT_FEATURES * 4                           # output (f32, 784)
    )

    out = pl.pallas_call(
        decoder_kernel,
        out_shape=jax.ShapeDtypeStruct((batch_p, OUT_FEATURES), jnp.float32),
        grid=grid,
        in_specs=[
            pl.BlockSpec((tm, IN_FEATURES), lambda i: (i, 0)),        # x tile
            pl.BlockSpec((IN_FEATURES, HIDDEN), lambda i: (0, 0)),    # W1 (resident)
            pl.BlockSpec((1, HIDDEN), lambda i: (0, 0)),              # b1 (resident)
            pl.BlockSpec((HIDDEN, OUT_PAD), lambda i: (0, 0)),        # W2 (resident)
            pl.BlockSpec((1, OUT_PAD), lambda i: (0, 0)),             # b2 (resident)
        ],
        # 784 == full array last dim -> allowed even though not a 128 multiple.
        out_specs=pl.BlockSpec((tm, OUT_FEATURES), lambda i: (i, 0)),
        compiler_params=pltpu.CompilerParams(
            dimension_semantics=("parallel",),                        # 2 TCs on v7x
            vmem_limit_bytes=48 * 1024 * 1024,
        ),
        cost_estimate=pl.CostEstimate(
            flops=flops, transcendentals=0, bytes_accessed=bytes_accessed),
    )(x_in, w1_k, b1_k, w2_k, b2_k)

    if batch_p != batch:
        out = out[:batch]
    return out


def reference_forward_f32(x, w1, b1, w2, b2):
    a1 = jnp.maximum(x @ w1 + b1, 0.0)
    a2 = jnp.maximum(a1 @ w2 + b2, 0.0)
    return a2


def reference_forward_bf16(x, w1, b1, w2, b2):
    # Matches the kernel's precision: bf16 matmul operands, f32 accum/epilogue.
    h1 = jnp.dot(x.astype(jnp.bfloat16), w1.astype(jnp.bfloat16),
                 preferred_element_type=jnp.float32)
    a1 = jnp.maximum(h1 + b1, 0.0)
    h2 = jnp.dot(a1.astype(jnp.bfloat16), w2.astype(jnp.bfloat16),
                 preferred_element_type=jnp.float32)
    a2 = jnp.maximum(h2 + b2, 0.0)
    return a2


if __name__ == "__main__":
    key = jax.random.PRNGKey(0)
    kx, kp = jax.random.split(key)

    batch = 8
    x = jax.random.normal(kx, (batch, IN_FEATURES), jnp.float32)
    w1, b1, w2, b2 = init_params(kp)
    params = prepare_params(w1, b1, w2, b2)

    out = decoder_forward(x, params)
    out = jax.block_until_ready(out)

    assert out.shape == (batch, OUT_FEATURES)
    ref_bf16 = reference_forward_bf16(x, w1, b1, w2, b2)
    ref_f32 = reference_forward_f32(x, w1, b1, w2, b2)
    # Exact-precision check vs a reference using the same bf16 matmul precision.
    assert jnp.allclose(out, ref_bf16, atol=2e-3, rtol=2e-3)
    # Loose check vs the pure-f32 PyTorch-equivalent forward.
    assert jnp.allclose(out, ref_f32, atol=1e-1, rtol=1e-1)

    print("KERNEL_OK")
</pallas_src>

<mosaic_0001>
module attributes {stable_mosaic.version = 11 : i64} {
  func.func @decoder_kernel(%arg0: i32, %arg1: memref<8x128xf32, #tpu.memory_space<vmem>>, %arg2: memref<128x128xbf16, #tpu.memory_space<vmem>>, %arg3: memref<1x128xf32, #tpu.memory_space<vmem>>, %arg4: memref<128x896xbf16, #tpu.memory_space<vmem>>, %arg5: memref<1x896xf32, #tpu.memory_space<vmem>>, %arg6: memref<8x784xf32, #tpu.memory_space<vmem>>) attributes {dimension_semantics = [#tpu.dimension_semantics<parallel>], iteration_bounds = array<i64: 1>, scalar_prefetch = 0 : i64, scratch_operands = 0 : i64, tpu.core_type = #tpu.core_type<tc>, window_params = [{transform_indices = @transform_0, window_bounds = array<i64: 8, 128>}, {pipeline_mode = #tpu.pipeline_mode<synchronous>, transform_indices = @transform_1, window_bounds = array<i64: 128, 128>}, {pipeline_mode = #tpu.pipeline_mode<synchronous>, transform_indices = @transform_2, window_bounds = array<i64: 1, 128>}, {pipeline_mode = #tpu.pipeline_mode<synchronous>, transform_indices = @transform_3, window_bounds = array<i64: 128, 896>}, {pipeline_mode = #tpu.pipeline_mode<synchronous>, transform_indices = @transform_4, window_bounds = array<i64: 1, 896>}, {transform_indices = @transform_5, window_bounds = array<i64: 8, 784>}]} {
    %c0 = arith.constant 0 : index
    %c0_0 = arith.constant 0 : index
    %0 = vector.load %arg1[%c0, %c0_0] : memref<8x128xf32, #tpu.memory_space<vmem>>, vector<8x128xf32>
    %1 = arith.truncf %0 : vector<8x128xf32> to vector<8x128xbf16>
    %c0_1 = arith.constant 0 : index
    %c0_2 = arith.constant 0 : index
    %2 = vector.load %arg2[%c0_1, %c0_2] : memref<128x128xbf16, #tpu.memory_space<vmem>>, vector<128x128xbf16>
    %cst = arith.constant dense<0.000000e+00> : vector<8x128xf32>
    %3 = tpu.matmul %1, %2, %cst {dimension_numbers = #tpu.dot_dimension_numbers<[1], [0], [0], [1], [0, 0, 1, 1], [], []>} : vector<8x128xbf16>, vector<128x128xbf16>, vector<8x128xf32> -> vector<8x128xf32>
    %c0_3 = arith.constant 0 : index
    %c0_4 = arith.constant 0 : index
    %4 = vector.load %arg3[%c0_3, %c0_4] : memref<1x128xf32, #tpu.memory_space<vmem>>, vector<1x128xf32>
    %5 = vector.broadcast %4 : vector<1x128xf32> to vector<8x128xf32>
    %6 = arith.addf %3, %5 : vector<8x128xf32>
    %cst_5 = arith.constant 0.000000e+00 : f32
    %7 = vector.broadcast %cst_5 : f32 to vector<8x128xf32>
    %8 = arith.maximumf %6, %7 : vector<8x128xf32>
    %9 = arith.truncf %8 : vector<8x128xf32> to vector<8x128xbf16>
    %c0_6 = arith.constant 0 : index
    %c0_7 = arith.constant 0 : index
    %10 = vector.load %arg4[%c0_6, %c0_7] : memref<128x896xbf16, #tpu.memory_space<vmem>>, vector<128x896xbf16>
    %cst_8 = arith.constant dense<0.000000e+00> : vector<8x896xf32>
    %11 = tpu.matmul %9, %10, %cst_8 {dimension_numbers = #tpu.dot_dimension_numbers<[1], [0], [0], [1], [0, 0, 1, 1], [], []>} : vector<8x128xbf16>, vector<128x896xbf16>, vector<8x896xf32> -> vector<8x896xf32>
    %c0_9 = arith.constant 0 : index
    %c0_10 = arith.constant 0 : index
    %12 = vector.load %arg5[%c0_9, %c0_10] : memref<1x896xf32, #tpu.memory_space<vmem>>, vector<1x896xf32>
    %13 = vector.broadcast %12 : vector<1x896xf32> to vector<8x896xf32>
    %14 = arith.addf %11, %13 : vector<8x896xf32>
    %cst_11 = arith.constant 0.000000e+00 : f32
    %15 = vector.broadcast %cst_11 : f32 to vector<8x896xf32>
    %16 = arith.maximumf %14, %15 : vector<8x896xf32>
    %17 = vector.extract_strided_slice %16 {offsets = [0, 0], sizes = [8, 784], strides = [1, 1]} : vector<8x896xf32> to vector<8x784xf32>
    %c0_12 = arith.constant 0 : index
    %c0_13 = arith.constant 0 : index
    %18 = vector.load %arg6[%c0_12, %c0_13] : memref<8x784xf32, #tpu.memory_space<vmem>>, vector<8x784xf32>
    tpu.vector_store %arg6[%c0_12, %c0_13], %17 {strides = array<i32>} : memref<8x784xf32, #tpu.memory_space<vmem>>, vector<8x784xf32>,
    return
  }
  func.func @transform_0(%arg0: i32) -> (i32, i32) {
    %c0_i32 = arith.constant 0 : i32
    %c0_i32_0 = arith.constant 0 : i32
    return %arg0, %c0_i32 : i32, i32
  }
  func.func @transform_1(%arg0: i32) -> (i32, i32) {
    %c0_i32 = arith.constant 0 : i32
    %c0_i32_0 = arith.constant 0 : i32
    %c0_i32_1 = arith.constant 0 : i32
    return %c0_i32, %c0_i32_0 : i32, i32
  }
  func.func @transform_2(%arg0: i32) -> (i32, i32) {
    %c0_i32 = arith.constant 0 : i32
    %c0_i32_0 = arith.constant 0 : i32
    %c0_i32_1 = arith.constant 0 : i32
    return %c0_i32, %c0_i32_0 : i32, i32
  }
  func.func @transform_3(%arg0: i32) -> (i32, i32) {
    %c0_i32 = arith.constant 0 : i32
    %c0_i32_0 = arith.constant 0 : i32
    %c0_i32_1 = arith.constant 0 : i32
    return %c0_i32, %c0_i32_0 : i32, i32
  }
  func.func @transform_4(%arg0: i32) -> (i32, i32) {
    %c0_i32 = arith.constant 0 : i32
    %c0_i32_0 = arith.constant 0 : i32
    %c0_i32_1 = arith.constant 0 : i32
    return %c0_i32, %c0_i32_0 : i32, i32
  }
  func.func @transform_5(%arg0: i32) -> (i32, i32) {
    %c0_i32 = arith.constant 0 : i32
    %c0_i32_0 = arith.constant 0 : i32
    return %arg0, %c0_i32 : i32, i32
  }
}

</mosaic_0001>

<bundles_post_ra>
// kernel: tpu_custom_call.1
= control target key start
LH: loop header
LB: loop body
LE: loop exit
PB: predicated region body
PF: predicated region fallthrough
CT: control target
= control target key end

     0   :  { %10 = vsyncpa [#allocation3], 0  ;;  %s1190_s0 = inlined_call_operand.hbm [shape: f32[8,128], index: 0, kind: input, shape index: {}]   ;;  %s1191_s1 = inlined_call_operand.hbm [shape: bf16[128,128], index: 1, kind: input, shape index: {}]   ;;  %s1192_s2 = inlined_call_operand.vmem [shape: f32[1,128], index: 2, kind: input, shape index: {}]   ;;  %s1193_s3 = inlined_call_operand.hbm [shape: bf16[128,896], index: 3, kind: input, shape index: {}]   ;;  %s1194_s4 = inlined_call_operand.vmem [shape: f32[1,896], index: 4, kind: input, shape index: {}]   ;;  %s1195_s5 = inlined_call_operand.hbm [shape: f32[8,784], index: 5, kind: output, shape index: {}]  }
   0x1   :  { %11 = vsyncpa [#allocation6], 0 }
   0x2   :  { %12 = vsyncpa [#allocation4], 0  ;;  %s1075_s18 = smov [#allocation5]   ;;  %s981_s22 = scalar_lea.hbm %s1191_s1, 1024 }
   0x3   :  { %s28_s19 = sshll.u32 %s1075_s18, 4  ;;  %p982_p0 = scmp.ne.s32.totalorder %s1191_s1, %s981_s22  ;;  %s29_s19 = int_to_ptr.vmem [resolvable:$true] %s28_s19 }
   0x4   :  { %p985_p1 = scmp.lt.u32.totalorder %s981_s22, %s1191_s1 }
   0x6   :  { %p987_p2 = pnand %p985_p1, %p982_p0 }
   0x8   :  { %990 = shalt.err (!%p987_p2)
}
   0x9   :  { %s991_s27 = scalar_lea.vmem %s29_s19, 1024  ;;  %p996_p4 = scmp.lt.s32.totalorder %s29_s19, %s29_s19 }
   0xa   :  { %p992_p3 = scmp.ne.s32.totalorder %s29_s19, %s991_s27  ;;  %p997_p5 = scmp.lt.s32.totalorder %s991_s27, %s991_s27 }
   0xc   :  { %p998_p6 = por %p997_p5, %p996_p4 }
   0xe   :  { %p999_p7 = pnand %p998_p6, %p992_p3 }
  0x10   :  { %1002 = shalt.err (!%p999_p7)
}
  0x11   :  { %s1076_s28 = smov 64   ;;  %s1077_s29 = smov 4  }
  0x12   :  { %34 = dma.hbm_to_vmem [thread:$0]  %s1191_s1, 1024, %s29_s19, [#allocation6], %s1076_s28, %s1076_s28, %s1077_s29  }
  0x13   :  { %s1078_s7 = smov [#allocation2]   ;;  %s1079_s9 = smov [#allocation7]  }
  0x14   :  { %s19_s8 = sshll.u32 %s1078_s7, 4  ;;  %s42_s10 = sshll.u32 %s1079_s9, 4  ;;  %s20_s8 = int_to_ptr.vmem [resolvable:$true] %s19_s8  ;;  %s43_s10 = int_to_ptr.vmem [resolvable:$true] %s42_s10 }
  0x15   :  { %s1003_s13 = scalar_lea.hbm %s1190_s0, 128 }
  0x16   :  { %p1004_p8 = scmp.ne.s32.totalorder %s1190_s0, %s1003_s13  ;;  %p1007_p9 = scmp.lt.u32.totalorder %s1003_s13, %s1190_s0 }
  0x18   :  { %p1009_p10 = pnand %p1007_p9, %p1004_p8 }
  0x1a   :  { %1012 = shalt.err (!%p1009_p10)
}
  0x1b   :  { %s1013_s1 = scalar_lea.vmem %s20_s8, 128  ;;  %p1018_p12 = scmp.lt.s32.totalorder %s20_s8, %s20_s8 }
  0x1c   :  { %p1014_p11 = scmp.ne.s32.totalorder %s20_s8, %s1013_s1  ;;  %p1019_p13 = scmp.lt.s32.totalorder %s1013_s1, %s1013_s1 }
  0x1e   :  { %p1020_p0 = por %p1019_p13, %p1018_p12 }
  0x20   :  { %p1021_p1 = pnand %p1020_p0, %p1014_p11 }
  0x22   :  { %1024 = shalt.err (!%p1021_p1)
}
  0x23   :  { %22 = dma.hbm_to_vmem [thread:$0]  %s1190_s0, 128, %s20_s8, [#allocation3]  }
  0x24   :  { %s1025_s22 = scalar_lea.hbm %s1193_s3, 7168 }
  0x25   :  { %p1026_p2 = scmp.ne.s32.totalorder %s1193_s3, %s1025_s22  ;;  %p1029_p3 = scmp.lt.u32.totalorder %s1025_s22, %s1193_s3 }
  0x27   :  { %p1031_p4 = pnand %p1029_p3, %p1026_p2 }
  0x29   :  { %1034 = shalt.err (!%p1031_p4)
}
  0x2a   :  { %s1035_s27 = scalar_lea.vmem %s43_s10, 7168  ;;  %p1040_p6 = scmp.lt.s32.totalorder %s43_s10, %s43_s10 }
  0x2b   :  { %p1036_p5 = scmp.ne.s32.totalorder %s43_s10, %s1035_s27  ;;  %p1041_p7 = scmp.lt.s32.totalorder %s1035_s27, %s1035_s27 }
  0x2d   :  { %p1042_p8 = por %p1041_p7, %p1040_p6 }
  0x2f   :  { %p1043_p9 = pnand %p1042_p8, %p1036_p5 }
  0x31   :  { %1046 = shalt.err (!%p1043_p9)
}
  0x32   :  { %s1080_s0 = smov 448   ;;  %s1081_s28 = smov 28  }
  0x33   :  { %48 = dma.hbm_to_vmem [thread:$0]  %s1193_s3, 7168, %s43_s10, [#allocation6], %s1080_s0, %s1080_s0, %s1081_s28  }
  0x34   :  { %1069 = dma.done.wait [#allocation3], 128  }
  0x35   :  { %1070 = vsyncadd [#allocation3], 4294967168 }
  0x36   :  { %1071 = dma.done.wait [#allocation6], 8192  }
  0x37   :  { %1072 = vsyncadd [#allocation6], 4294959104  ;;  %v1082_v0 = vmov 0.0   ;;  %vm1083_vm0 = vmmov 0   ;;  %v893_v1 = vld [vmem:[#allocation5] sm:$0xff]   ;;  %v894_v2 = vld [vmem:[#allocation5 + $0x8] sm:$0xff]  }
  0x38   :  { %842 = vmatprep.subr.bf16.mxu0 %v1082_v0  ;;  %858 = vmatprep.mubr.msk.bf16.mxu0 %vm1083_vm0, %v1082_v0  ;;  %v895_v3 = vld [vmem:[#allocation5 + $0x10] sm:$0xff]   ;;  %v901_v4 = vld [vmem:[#allocation7 + $0x4] ss:$28 sps:$4 sm:$0xff]   ;;  %v896_v5 = vld [vmem:[#allocation5 + $0x18] sm:$0xff]   ;;  %v1084_v44 = vmov 0   ;;  %vm741_vm1 = vcmask 130048  }
  0x39   :  { %843 = vmatpush3.bf16.msra.mxu0 %v893_v1  ;;  %v906_v6 = vld [vmem:[#allocation7] ss:$28 sps:$4 sm:$0xff]   ;;  %565 = vmatprep.subr.bf16.mxu1 %v901_v4  ;;  %v912_v9 = vld [vmem:[#allocation7 + $0x38] ss:$28 sps:$4 sm:$0xff]   ;;  %v918_v11 = vld [vmem:[#allocation7 + $0x70] ss:$28 sps:$4 sm:$0xff]  }
  0x3a   :  { %844 = vmatprep.subr.bf16.mxu0 %v1082_v0  ;;  %v907_v7 = vld [vmem:[#allocation7 + $0x3c] ss:$28 sps:$4 sm:$0xff]   ;;  %566 = vmatpush1.bf16.msra.mxu1 %v906_v6  ;;  %v897_v8 = vld [vmem:[#allocation5 + $0x20] sm:$0xff]   ;;  %v913_v10 = vld [vmem:[#allocation7 + $0x74] ss:$28 sps:$4 sm:$0xff]  }
  0x3b   :  { %567 = vmatprep.subr.bf16.mxu1 %v907_v7  ;;  %v919_v12 = vld [vmem:[#allocation7 + $0xac] ss:$28 sps:$4 sm:$0xff]   ;;  %v925_v15 = vld [vmem:[#allocation7 + $0xe4] ss:$28 sps:$4 sm:$0xff]   ;;  %v899_v16 = vld [vmem:[#allocation5 + $0x30] sm:$0xff]   ;;  %597 = vmatprep.mubr.bf16.mxu1 %v1084_v44 }
  0x3c   :  { %v898_v13 = vld [vmem:[#allocation5 + $0x28] sm:$0xff]   ;;  %v900_v17 = vld [vmem:[#allocation5 + $0x38] sm:$0xff]   ;;  %v937_v23 = vld [vmem:[#allocation7 + $0x154] ss:$28 sps:$4 sm:$0xff]  }
  0x3d   :  { %845 = vmatpush3.bf16.msra.mxu0 %v894_v2  ;;  %v924_v14 = vld [vmem:[#allocation7 + $0xa8] ss:$28 sps:$4 sm:$0xff]   ;;  %v930_v18 = vld [vmem:[#allocation7 + $0xe0] ss:$28 sps:$4 sm:$0xff]   ;;  %v936_v22 = vld [vmem:[#allocation7 + $0x118] ss:$28 sps:$4 sm:$0xff]  }
  0x3e   :  { %846 = vmatprep.subr.bf16.mxu0 %v1082_v0  ;;  %568 = vmatpush1.bf16.msra.mxu1 %v912_v9  ;;  %v931_v19 = vld [vmem:[#allocation7 + $0x11c] ss:$28 sps:$4 sm:$0xff]   ;;  %v905_v21 = vld [vmem:[#allocation7 + $0xc] ss:$28 sps:$4 sm:$0xff]   ;;  %v911_v26 = vld [vmem:[#allocation7 + $0x44] ss:$28 sps:$4 sm:$0xff]  }
  0x3f   :  { %569 = vmatprep.subr.bf16.mxu1 %v913_v10  ;;  %v61_v20 = vld [vmem:[#allocation2] sm:$0xff]  ;;  %v903_v24 = vld [vmem:[#allocation7 + $0x8] ss:$28 sps:$4 sm:$0xff]   ;;  %v942_v27 = vld [vmem:[#allocation7 + $0x150] ss:$28 sps:$4 sm:$0xff]  }
  0x40   :  { %v62_v25 = vpack.c.bf16 %v61_v20, %v61_v20  ;;  %v909_v28 = vld [vmem:[#allocation7 + $0x40] ss:$28 sps:$4 sm:$0xff]   ;;  %v915_v30 = vld [vmem:[#allocation7 + $0x78] ss:$28 sps:$4 sm:$0xff]   ;;  %v921_v32 = vld [vmem:[#allocation7 + $0xb0] ss:$28 sps:$4 sm:$0xff]  }
  0x41   :  { %847 = vmatpush3.bf16.msra.mxu0 %v895_v3  ;;  %v917_v29 = vld [vmem:[#allocation7 + $0x7c] ss:$28 sps:$4 sm:$0xff]   ;;  %v923_v31 = vld [vmem:[#allocation7 + $0xb4] ss:$28 sps:$4 sm:$0xff]   ;;  %v929_v33 = vld [vmem:[#allocation7 + $0xec] ss:$28 sps:$4 sm:$0xff]  }
  0x42   :  { %848 = vmatprep.subr.bf16.mxu0 %v1082_v0  ;;  %570 = vmatpush1.bf16.msra.mxu1 %v918_v11  ;;  %v927_v34 = vld [vmem:[#allocation7 + $0xe8] ss:$28 sps:$4 sm:$0xff]   ;;  %v933_v36 = vld [vmem:[#allocation7 + $0x120] ss:$28 sps:$4 sm:$0xff]   ;;  %v939_v38 = vld [vmem:[#allocation7 + $0x158] ss:$28 sps:$4 sm:$0xff]  }
  0x43   :  { %571 = vmatprep.subr.bf16.mxu1 %v919_v12  ;;  %v935_v35 = vld [vmem:[#allocation7 + $0x124] ss:$28 sps:$4 sm:$0xff]   ;;  %v941_v37 = vld [vmem:[#allocation7 + $0x15c] ss:$28 sps:$4 sm:$0xff]   ;;  %v943_v39 = vld [vmem:[#allocation7 + $0x18c] ss:$28 sps:$4 sm:$0xff]  }
  0x44   :  { %v947_v40 = vld [vmem:[#allocation7 + $0x194] ss:$28 sps:$4 sm:$0xff]   ;;  %v948_v42 = vld [vmem:[#allocation7 + $0x188] ss:$28 sps:$4 sm:$0xff]   ;;  %v759_v45 = vld [vmem:[%s1192_s2] ss:$0 sm:$0xff] }
  0x45   :  { %849 = vmatpush3.bf16.msra.mxu0 %v896_v5  ;;  %v945_v41 = vld [vmem:[#allocation7 + $0x190] ss:$28 sps:$4 sm:$0xff]   ;;  %v952_v53 = vld [vmem:[#allocation7 + $0x18] ss:$28 sps:$4 sm:$0xff]   ;;  %v953_v56 = vld [vmem:[#allocation7 + $0x48] ss:$28 sps:$4 sm:$0xff]  }
  0x46   :  { %850 = vmatprep.subr.bf16.mxu0 %v1082_v0  ;;  %572 = vmatpush1.bf16.msra.mxu1 %v924_v14  ;;  %v951_v43 = vld [vmem:[#allocation7 + $0x14] ss:$28 sps:$4 sm:$0xff]   ;;  %v955_v55 = vld [vmem:[#allocation7 + $0x4c] ss:$28 sps:$4 sm:$0xff]   ;;  %v959_v58 = vld [vmem:[#allocation7 + $0x84] ss:$28 sps:$4 sm:$0xff]  }
  0x47   :  { %573 = vmatprep.subr.bf16.mxu1 %v925_v15  ;;  %v949_v52 = vld [vmem:[#allocation7 + $0x10] ss:$28 sps:$4 sm:$0xff]   ;;  %v957_v59 = vld [vmem:[#allocation7 + $0x80] ss:$28 sps:$4 sm:$0xff]   ;;  %v960_v60 = vld [vmem:[#allocation7 + $0x88] ss:$28 sps:$4 sm:$0xff]  }
  0x48   :  { %v956_v57 = vld [vmem:[#allocation7 + $0x50] ss:$28 sps:$4 sm:$0xff]   ;;  %v963_v61 = vld [vmem:[#allocation7 + $0xbc] ss:$28 sps:$4 sm:$0xff]   ;;  %v969_v5 = vld [vmem:[#allocation7 + $0x128] ss:$28 sps:$4 sm:$0xff]  }
  0x49   :  { %851 = vmatpush3.bf16.msra.mxu0 %v897_v8  ;;  %v961_v62 = vld [vmem:[#allocation7 + $0xb8] ss:$28 sps:$4 sm:$0xff]   ;;  %v964_v63 = vld [vmem:[#allocation7 + $0xc0] ss:$28 sps:$4 sm:$0xff]   ;;  %v965_v2 = vld [vmem:[#allocation7 + $0xf0] ss:$28 sps:$4 sm:$0xff]  }
  0x4a   :  { %852 = vmatprep.subr.bf16.mxu0 %v1082_v0  ;;  %574 = vmatpush1.bf16.msra.mxu1 %v930_v18  ;;  %v967_v1 = vld [vmem:[#allocation7 + $0xf4] ss:$28 sps:$4 sm:$0xff]   ;;  %v971_v4 = vld [vmem:[#allocation7 + $0x12c] ss:$28 sps:$4 sm:$0xff]   ;;  %v975_v7 = vld [vmem:[#allocation7 + $0x164] ss:$28 sps:$4 sm:$0xff]  }
  0x4b   :  { %575 = vmatprep.subr.bf16.mxu1 %v931_v19  ;;  %v968_v3 = vld [vmem:[#allocation7 + $0xf8] ss:$28 sps:$4 sm:$0xff]   ;;  %v972_v6 = vld [vmem:[#allocation7 + $0x130] ss:$28 sps:$4 sm:$0xff]   ;;  %v973_v8 = vld [vmem:[#allocation7 + $0x160] ss:$28 sps:$4 sm:$0xff]  }
  0x4c   :  { %v976_v9 = vld [vmem:[#allocation7 + $0x168] ss:$28 sps:$4 sm:$0xff]   ;;  %v979_v10 = vld [vmem:[#allocation7 + $0x19c] ss:$28 sps:$4 sm:$0xff]  }
  0x4d   :  { %853 = vmatpush3.bf16.msra.mxu0 %v898_v13  ;;  %v977_v11 = vld [vmem:[#allocation7 + $0x198] ss:$28 sps:$4 sm:$0xff]   ;;  %v980_v12 = vld [vmem:[#allocation7 + $0x1a0] ss:$28 sps:$4 sm:$0xff]   ;;  %v242_v13 = vlaneseq }
  0x4e   :  { %854 = vmatprep.subr.bf16.mxu0 %v1082_v0  ;;  %576 = vmatpush1.bf16.msra.mxu1 %v936_v22 }
  0x4f   :  { %577 = vmatprep.subr.bf16.mxu1 %v937_v23  ;;  %v243_v14 = vshrl.u32 %v242_v13, 7 }
  0x51   :  { %855 = vmatpush3.bf16.msra.mxu0 %v899_v16  ;;  %v244_v15 = vsub.s32 0, %v243_v14  ;;  %v252_v16 = vsub.s32 2, %v243_v14  ;;  %v248_v18 = vsub.s32 1, %v243_v14  ;;  %v256_v19 = vsub.s32 3, %v243_v14 }
  0x52   :  { %856 = vmatprep.subr.bf16.mxu0 %v1082_v0  ;;  %578 = vmatpush1.bf16.msra.mxu1 %v942_v27 }
  0x53   :  { %579 = vmatprep.subr.bf16.mxu1 %v943_v39  ;;  %v260_v39 = vsub.s32 4, %v243_v14 }
  0x55   :  { %857 = vmatpush3.bf16.msra.mxu0 %v900_v17  ;;  %v240_v17 = vld [vmem:[%s1194_s4] sm:$0xff]  ;;  %s1085_s4 = smov [#allocation8]  }
  0x56   :  { %606 = vmatprep.subr.bf16.mxu0 %v905_v21  ;;  %580 = vmatpush1.bf16.msra.mxu1 %v948_v42  ;;  %v245_v20 = vrot.slane %v240_v17, %v244_v15  ;;  %v253_v21 = vrot.slane %v240_v17, %v252_v16  ;;  %v249_v22 = vrot.slane %v240_v17, %v248_v18  ;;  %s749_s8 = sshll.u32 %s1085_s4, 4  ;;  %s750_s8 = int_to_ptr.vmem [resolvable:$true] %s749_s8 }
  0x57   :  { %647 = vmatprep.subr.bf16.mxu1 %v951_v43  ;;  %v257_v23 = vrot.slane %v240_v17, %v256_v19  ;;  %v261_v42 = vrot.slane %v240_v17, %v260_v39  ;;  %s1047_s9 = scalar_lea.vmem %s750_s8, 896  ;;  %p1052_p11 = scmp.lt.s32.totalorder %s750_s8, %s750_s8 }
  0x58   :  { %859 = vmatmul.mubr.bf16.vlgmr.msra.gmra.mrb[0].mxu0 %v62_v25  ;;  %p1048_p10 = scmp.ne.s32.totalorder %s750_s8, %s1047_s9  ;;  %p1053_p12 = scmp.lt.s32.totalorder %s1047_s9, %s1047_s9 }
  0x59   :  { %607 = vmatpush1.bf16.msra.mxu0 %v903_v24  ;;  %638 = vmatprep.mubr.bf16.mxu0 %v1084_v44 }
  0x5a   :  { %608 = vmatprep.subr.bf16.mxu0 %v911_v26  ;;  %p1054_p13 = por %p1053_p12, %p1052_p11 }
  0x5c   :  { %p1055_p0 = pnand %p1054_p13, %p1048_p10 }
  0x5d   :  { %609 = vmatpush1.bf16.msra.mxu0 %v909_v28 }
  0x5e   :  { %610 = vmatprep.subr.bf16.mxu0 %v917_v29 }
  0x61   :  { %611 = vmatpush1.bf16.msra.mxu0 %v915_v30 }
  0x62   :  { %612 = vmatprep.subr.bf16.mxu0 %v923_v31 }
  0x65   :  { %613 = vmatpush1.bf16.msra.mxu0 %v921_v32 }
  0x66   :  { %614 = vmatprep.subr.bf16.mxu0 %v929_v33 }
  0x69   :  { %615 = vmatpush1.bf16.msra.mxu0 %v927_v34 }
  0x6a   :  { %616 = vmatprep.subr.bf16.mxu0 %v935_v35 }
  0x6d   :  { %617 = vmatpush1.bf16.msra.mxu0 %v933_v36 }
  0x6e   :  { %618 = vmatprep.subr.bf16.mxu0 %v941_v37 }
  0x71   :  { %619 = vmatpush1.bf16.msra.mxu0 %v939_v38 }
  0x72   :  { %620 = vmatprep.subr.bf16.mxu0 %v947_v40  ;;  %v268_v40 = vsub.s32 6, %v243_v14 }
  0x74   :  { %v269_v43 = vrot.slane %v240_v17, %v268_v40 }
  0x75   :  { %621 = vmatpush1.bf16.msra.mxu0 %v945_v41  ;;  %v264_v41 = vsub.s32 5, %v243_v14 }
  0x76   :  { %862 = vmatprep.subr.bf16.mxu0 %v1082_v0 }
 0x12b   :  { %v168_v46 = vpop.f32.mrb[0].mxu0 }
 0x12c   :  { %v169_v47 = vadd.f32 %v759_v45, %v168_v46  ;;  %v860_v48 = vpop.f32.mrb[1].mxu0 }
 0x12d   :  { %v171_v49 = vpop.f32.mrb[2].mxu0 }
 0x12e   :  { %v174_v50 = vmax.f32 %v169_v47, 0.0  ;;  %v861_v51 = vpop.f32.mrb[3].mxu0 }
 0x130   :  { %v175_v54 = vpack.c.bf16 %v174_v50, %v174_v50 }
 0x132   :  { %598 = vmatmul.mubr.bf16.vlgmr.msra.gmra.mrb[0].mxu1 %v175_v54  ;;  %639 = vmatmul.mubr.bf16.vlgmr.msra.gmra.mrb[4].mxu0 %v175_v54 }
 0x133   :  { %648 = vmatpush1.bf16.msra.mxu1 %v949_v52  ;;  %863 = vmatpush3.bf16.msra.mxu0 %v952_v53 }
 0x134   :  { %649 = vmatprep.subr.bf16.mxu1 %v955_v55  ;;  %864 = vmatprep.subr.bf16.mxu0 %v1082_v0 }
 0x135   :  { %679 = vmatprep.mubr.bf16.mxu1 %v1084_v44  ;;  %878 = vmatprep.mubr.msk.bf16.mxu0 %vm1083_vm0, %v1082_v0  ;;  %v265_v44 = vrot.slane %v240_v17, %v264_v41 }
 0x137   :  { %650 = vmatpush1.bf16.msra.mxu1 %v953_v56  ;;  %865 = vmatpush3.bf16.msra.mxu0 %v956_v57 }
 0x138   :  { %651 = vmatprep.subr.bf16.mxu1 %v959_v58  ;;  %866 = vmatprep.subr.bf16.mxu0 %v1082_v0 }
 0x13b   :  { %652 = vmatpush1.bf16.msra.mxu1 %v957_v59  ;;  %867 = vmatpush3.bf16.msra.mxu0 %v960_v60 }
 0x13c   :  { %653 = vmatprep.subr.bf16.mxu1 %v963_v61  ;;  %868 = vmatprep.subr.bf16.mxu0 %v1082_v0 }
 0x13f   :  { %654 = vmatpush1.bf16.msra.mxu1 %v961_v62  ;;  %869 = vmatpush3.bf16.msra.mxu0 %v964_v63 }
 0x140   :  { %655 = vmatprep.subr.bf16.mxu1 %v967_v1  ;;  %870 = vmatprep.subr.bf16.mxu0 %v1082_v0 }
 0x143   :  { %656 = vmatpush1.bf16.msra.mxu1 %v965_v2  ;;  %871 = vmatpush3.bf16.msra.mxu0 %v968_v3 }
 0x144   :  { %657 = vmatprep.subr.bf16.mxu1 %v971_v4  ;;  %872 = vmatprep.subr.bf16.mxu0 %v1082_v0 }
 0x147   :  { %658 = vmatpush1.bf16.msra.mxu1 %v969_v5  ;;  %873 = vmatpush3.bf16.msra.mxu0 %v972_v6 }
 0x148   :  { %659 = vmatprep.subr.bf16.mxu1 %v975_v7  ;;  %874 = vmatprep.subr.bf16.mxu0 %v1082_v0 }
 0x14b   :  { %660 = vmatpush1.bf16.msra.mxu1 %v973_v8  ;;  %875 = vmatpush3.bf16.msra.mxu0 %v976_v9 }
 0x14c   :  { %661 = vmatprep.subr.bf16.mxu1 %v979_v10  ;;  %876 = vmatprep.subr.bf16.mxu0 %v1082_v0 }
 0x14f   :  { %662 = vmatpush1.bf16.msra.mxu1 %v977_v11  ;;  %877 = vmatpush3.bf16.msra.mxu0 %v980_v12 }
 0x152   :  { %680 = vmatmul.mubr.bf16.vlgmr.msra.gmra.mrb[4].mxu1 %v175_v54  ;;  %879 = vmatmul.mubr.bf16.vlgmr.msra.gmra.mrb[8].mxu0 %v175_v54 }
 0x205   :  { %v599_v24 = vpop.f32.mrb[0].mxu1  ;;  %v640_v0 = vpop.f32.mrb[4].mxu0 }
 0x206   :  { %v600_v25 = vadd.f32 %v599_v24, %v245_v20  ;;  %v641_v26 = vadd.f32 %v640_v0, %v253_v21  ;;  %v601_v27 = vpop.f32.mrb[1].mxu1  ;;  %v642_v28 = vpop.f32.mrb[5].mxu0 }
 0x207   :  { %v602_v29 = vadd.f32 %v601_v27, %v249_v22  ;;  %v643_v30 = vadd.f32 %v642_v28, %v257_v23  ;;  %v603_v31 = vpop.f32.mrb[2].mxu1  ;;  %v644_v32 = vpop.f32.mrb[6].mxu0 }
 0x208   :  { %v728_v33 = vmax.f32 %v600_v25, 0.0  ;;  %v730_v34 = vmax.f32 %v641_v26, 0.0  ;;  %v604_v35 = vpop.f32.mrb[3].mxu1  ;;  %v645_v36 = vpop.f32.mrb[7].mxu0 }
 0x209   :  { %v729_v37 = vmax.f32 %v602_v29, 0.0  ;;  %v731_v38 = vmax.f32 %v643_v30, 0.0 }
 0x20a   :  { %735 = vst [vmem:[#allocation8] sm:$0xff] %v728_v33  ;;  %737 = vst [vmem:[#allocation8 + $0x10] sm:$0xff] %v730_v34 }
 0x20b   :  { %736 = vst [vmem:[#allocation8 + $0x8] sm:$0xff] %v729_v37  ;;  %738 = vst [vmem:[#allocation8 + $0x18] sm:$0xff] %v731_v38 }
 0x225   :  { %v681_v45 = vpop.f32.mrb[4].mxu1  ;;  %v722_v46 = vpop.f32.mrb[8].mxu0 }
 0x226   :  { %v682_v47 = vadd.f32 %v681_v45, %v261_v42  ;;  %v723_v48 = vadd.f32 %v722_v46, %v269_v43  ;;  %v683_v49 = vpop.f32.mrb[5].mxu1  ;;  %v880_v50 = vpop.f32.mrb[9].mxu0 }
 0x227   :  { %v684_v51 = vadd.f32 %v683_v49, %v265_v44  ;;  %v685_v52 = vpop.f32.mrb[6].mxu1  ;;  %v725_v53 = vpop.f32.mrb[10].mxu0 }
 0x228   :  { %v732_v54 = vmax.f32 %v682_v47, 0.0  ;;  %v734_v55 = vmax.f32 %v723_v48, 0.0  ;;  %v686_v56 = vpop.f32.mrb[7].mxu1  ;;  %v881_v57 = vpop.f32.mrb[11].mxu0 }
 0x229   :  { %v733_v58 = vmax.f32 %v684_v51, 0.0 }
 0x22a   :  { %739 = vst [vmem:[#allocation8 + $0x20] sm:$0xff] %v732_v54  ;;  %742 = vst.msk [vmem:[#allocation8 + $0x30] sm:$0xff] %vm741_vm1, %v734_v55 }
 0x22b   :  { %740 = vst [vmem:[#allocation8 + $0x28] sm:$0xff] %v733_v58 }
 0x22c   :  { %1058 = shalt.err (!%p1055_p0)
}
 0x22d   :  { %s1059_s12 = scalar_lea.hbm %s1195_s5, 896 }
 0x22e   :  { %p1060_p1 = scmp.ne.s32.totalorder %s1195_s5, %s1059_s12  ;;  %p1063_p2 = scmp.lt.u32.totalorder %s1059_s12, %s1195_s5 }
 0x230   :  { %p1065_p3 = pnand %p1063_p2, %p1060_p1 }
 0x232   :  { %1068 = shalt.err (!%p1065_p3)
}
 0x233   :  { %752 = dma.vmem_to_hbm [thread:$0]  %s750_s8, 896, %s1195_s5, [#allocation4]  }
 0x234   :  { %1073 = dma.done.wait [#allocation4], 896  }
 0x235   :  { %1074 = vsyncadd [#allocation4], 4294966400 }
 0x236   :  { %756 = vsyncpa [#allocation3], 1 }
 0x237   :  { %757 = vsyncpa [#allocation6], 1 }
 0x238   :  { %758 = vsyncpa [#allocation4], 1 }

</bundles_post_ra>
